<compile_context>
chip_gen: v7x
topology: tpu7x:2x2x1
jax: 0.10.0
libtpu: 0.0.40
codegen_flags: <defaults>
</compile_context>

<pallas_src>
import functools

import jax
import jax.numpy as jnp
from jax import lax
from jax.experimental import pallas as pl
from jax.experimental.pallas import tpu as pltpu


def _round_up(x: int, m: int) -> int:
    return ((x + m - 1) // m) * m


def _cdiv(a: int, b: int) -> int:
    return (a + b - 1) // b


def _vmem_capacity_bytes() -> int:
    try:
        return int(pltpu.get_tpu_info().vmem_capacity_bytes)
    except Exception:
        return 64 * 1024 * 1024  # conservative (v7x-sized) fallback


def _fc_skip_kernel(z_ref, w1_ref, b1_ref, w2_ref, b2_ref, w3_ref, b3_ref,
                    out_ref, *, o_chunk):
    """One batch-tile of the MLP-with-skip forward. Weights stay VMEM-resident."""
    z = z_ref[...]                                            # (TB, Kp) bf16

    # h1 = relu(z @ W1 + b1): bf16 matmul, f32 accumulate, f32 epilogue.
    h1 = jnp.dot(z, w1_ref[...], preferred_element_type=jnp.float32)
    h1 = jnp.maximum(h1 + b1_ref[...], 0.0)                   # (TB, H) f32

    # h2 = relu(h1 @ W2 + b2)
    h2 = jnp.dot(h1.astype(jnp.bfloat16), w2_ref[...],
                 preferred_element_type=jnp.float32)
    h2 = jnp.maximum(h2 + b2_ref[...], 0.0)                   # (TB, H) f32

    # dropout(h2): identity in eval mode.
    # TODO(synk): training-mode dropout via pltpu.prng_seed + prng_random_bits
    #             (mask + scale by 1/(1-p)) not emitted.
    skip = (h2 + h1).astype(jnp.bfloat16)                     # (TB, H) bf16

    # out[:, j*OC:(j+1)*OC] = tanh(skip @ W3[:, chunk] + b3[:, chunk])
    # Chunked so the (TB, O) f32 pre-activation never lives whole and tanh
    # (EUP) of one chunk overlaps the MXU matmul of the next.
    n_chunks = w3_ref.shape[1] // o_chunk

    def chunk_body(j, carry):
        off = pl.multiple_of(j * o_chunk, o_chunk)
        pre = jnp.dot(skip, w3_ref[:, pl.ds(off, o_chunk)],
                      preferred_element_type=jnp.float32)
        out_ref[:, pl.ds(off, o_chunk)] = jnp.tanh(
            pre + b3_ref[:, pl.ds(off, o_chunk)])
        return carry

    lax.fori_loop(0, n_chunks, chunk_body, 0, unroll=(n_chunks <= 8))


@functools.partial(jax.jit, static_argnames=("out_channels", "out_dim"))
def fc_skip_connect_generator(z, params, *, out_channels, out_dim):
    """z: (B, num_z_units) float32 -> (B, C, D, D) float32."""
    w1, b1, w2, b2, w3, b3 = params          # w*: bf16 (in, out); b*: f32 (1, out)
    B, K = z.shape
    Kp = w1.shape[0]                         # K padded to multiple of 128
    H = w1.shape[1]
    O = out_channels * out_dim * out_dim     # true output width
    O_pad = w3.shape[1]                      # padded to multiple of 128

    # Column chunk for the third matmul (lane-dense, divides O_pad).
    OC = 512 if O_pad % 512 == 0 else (256 if O_pad % 256 == 0 else 128)

    # ---- generation-aware VMEM budget --------------------------------------
    vmem_phys = _vmem_capacity_bytes()
    # ~48 MiB usable on v7x (64 MiB physical), ~100 MiB on v5e/v6e (128 MiB).
    vmem_cap = min(int(0.78 * vmem_phys), vmem_phys - (16 << 20))

    bytes_w = (Kp * H + H * H + H * O_pad) * 2      # bf16 weights, single-buffered
    bytes_b = (2 * H + O_pad) * 4                   # f32 biases

    def tile_bytes(tb):
        io = 2 * tb * Kp * 2 + 2 * tb * O_pad * 4   # double-buffered z / out tiles
        tmp = 3 * tb * H * 4 + 2 * tb * OC * 4      # h1/h2/skip + per-chunk pre
        return io + tmp

    assert bytes_w + bytes_b + tile_bytes(16) <= vmem_cap, (
        "Resident weights + minimal batch tile exceed the VMEM budget "
        f"({bytes_w + bytes_b + tile_bytes(16)} > {vmem_cap} bytes); "
        "W3 must be tiled over its output dimension for this config.")
    # TODO(synk): add a W3-tiled fallback (extra grid axis over O-chunks with a
    #             persistent VMEM 'skip' scratch) for configs whose resident
    #             weights do not fit VMEM (large H / O on v7x).

    # ---- batch tile selection -----------------------------------------------
    tb_cap = 1024
    while tb_cap > 16 and bytes_w + bytes_b + tile_bytes(tb_cap) > vmem_cap:
        tb_cap -= 16
    if B > 16:
        # >= 2 grid steps so both v7x TensorCores get work (harmless on v5e/v6e).
        tb_cap = min(tb_cap, _round_up(_cdiv(B, 2), 16))
    tb_cap = max(16, min(tb_cap, _round_up(B, 16)))

    # Minimize padded rows first, then grid-step count (0.35 us/step overhead).
    best_key, TB = None, 16
    for tb in range(16, tb_cap + 1, 16):
        b_pad = _round_up(B, tb)
        key = (b_pad, b_pad // tb)
        if best_key is None or key < best_key:
            best_key, TB = key, tb
    B_pad = _round_up(B, TB)
    grid = (B_pad // TB,)

    # Pad batch rows and K columns with zeros; cast activations to bf16.
    z_p = jnp.pad(z.astype(jnp.bfloat16), ((0, B_pad - B), (0, Kp - K)))

    vmem_bytes = int(min(vmem_cap,
                         max(16 << 20,
                             int(1.25 * (bytes_w + bytes_b + tile_bytes(TB)))
                             + (2 << 20))))

    cost = pl.CostEstimate(
        flops=2 * B_pad * (Kp * H + H * H + H * O_pad),
        transcendentals=B_pad * O_pad,
        bytes_accessed=(B_pad * Kp * 2 + bytes_w + bytes_b + B_pad * O_pad * 4),
    )

    resident = dict(pipeline_mode=pl.Buffered(1))   # constant index_map: 1 buffer

    out_flat = pl.pallas_call(
        functools.partial(_fc_skip_kernel, o_chunk=OC),
        out_shape=jax.ShapeDtypeStruct((B_pad, O_pad), jnp.float32),
        grid_spec=pltpu.PrefetchScalarGridSpec(
            num_scalar_prefetch=0,
            grid=grid,
            in_specs=[
                pl.BlockSpec((TB, Kp), lambda i: (i, 0)),                 # z (streamed)
                pl.BlockSpec((Kp, H), lambda i: (0, 0), **resident),      # W1
                pl.BlockSpec((1, H), lambda i: (0, 0), **resident),       # b1
                pl.BlockSpec((H, H), lambda i: (0, 0), **resident),       # W2
                pl.BlockSpec((1, H), lambda i: (0, 0), **resident),       # b2
                pl.BlockSpec((H, O_pad), lambda i: (0, 0), **resident),   # W3
                pl.BlockSpec((1, O_pad), lambda i: (0, 0), **resident),   # b3
            ],
            out_specs=pl.BlockSpec((TB, O_pad), lambda i: (i, 0)),
        ),
        compiler_params=pltpu.CompilerParams(
            dimension_semantics=("parallel",),
            vmem_limit_bytes=vmem_bytes,
        ),
        cost_estimate=cost,
    )(z_p, w1, b1, w2, b2, w3, b3)

    return out_flat[:B, :O].reshape(B, out_channels, out_dim, out_dim)


def init_params(key, num_z_units, num_hidden_units, output_image_dim,
                output_image_channels):
    """nn.Linear-style init U(-1/sqrt(fan_in), +); weights stored (in, out) bf16.

    W1's input dim is zero-padded to a multiple of 128 (padded z columns are
    zero, math unchanged). W3/b3 output columns are zero-padded to a multiple
    of 128 so the kernel output is lane-dense; the extra columns are sliced
    off after the pallas_call.
    """
    output_image_size = output_image_dim * output_image_dim * output_image_channels
    k_pad = _round_up(num_z_units, 128)
    o_pad = _round_up(output_image_size, 128)

    def linear_init(k, fan_in, fan_out, pad_in=None, pad_out=None):
        kw, kb = jax.random.split(k)
        bound = 1.0 / float(fan_in) ** 0.5
        w = jax.random.uniform(kw, (fan_in, fan_out), jnp.float32, -bound, bound)
        b = jax.random.uniform(kb, (1, fan_out), jnp.float32, -bound, bound)
        if pad_in is not None and pad_in > fan_in:
            w = jnp.pad(w, ((0, pad_in - fan_in), (0, 0)))
        if pad_out is not None and pad_out > fan_out:
            w = jnp.pad(w, ((0, 0), (0, pad_out - fan_out)))
            b = jnp.pad(b, ((0, 0), (0, pad_out - fan_out)))
        return w.astype(jnp.bfloat16), b

    k1, k2, k3 = jax.random.split(key, 3)
    w1, b1 = linear_init(k1, num_z_units, num_hidden_units, pad_in=k_pad)
    w2, b2 = linear_init(k2, num_hidden_units, num_hidden_units)
    w3, b3 = linear_init(k3, num_hidden_units, output_image_size, pad_out=o_pad)
    return (w1, b1, w2, b2, w3, b3)


def _reference(z, params, out_channels, out_dim):
    """Plain-JAX reference matching the kernel's bf16-matmul / f32-epilogue math."""
    w1, b1, w2, b2, w3, b3 = params
    B, K = z.shape
    O = out_channels * out_dim * out_dim
    zb = jnp.pad(z, ((0, 0), (0, w1.shape[0] - K))).astype(jnp.bfloat16)
    h1 = jnp.maximum(
        jnp.dot(zb, w1, preferred_element_type=jnp.float32) + b1, 0.0)
    h2 = jnp.maximum(
        jnp.dot(h1.astype(jnp.bfloat16), w2,
                preferred_element_type=jnp.float32) + b2, 0.0)
    pre = jnp.dot((h2 + h1).astype(jnp.bfloat16), w3,
                  preferred_element_type=jnp.float32) + b3
    return jnp.tanh(pre)[:, :O].reshape(B, out_channels, out_dim, out_dim)


if __name__ == "__main__":
    # Small config consistent with the module's constructor.
    batch = 8
    num_z_units = 32
    num_hidden_units = 128
    output_image_dim = 16
    output_image_channels = 4
    p_drop = 0.3  # unused in eval-mode forward

    key = jax.random.PRNGKey(0)
    k_params, k_z = jax.random.split(key)

    params = init_params(k_params, num_z_units, num_hidden_units,
                         output_image_dim, output_image_channels)
    z = jax.random.normal(k_z, (batch, num_z_units), jnp.float32)

    out = fc_skip_connect_generator(
        z, params, out_channels=output_image_channels, out_dim=output_image_dim)
    out = jax.block_until_ready(out)

    ref = _reference(z, params, output_image_channels, output_image_dim)

    assert out.shape == (batch, output_image_channels, output_image_dim,
                         output_image_dim)
    assert jnp.allclose(out, ref, atol=5e-3, rtol=0.0), (
        float(jnp.max(jnp.abs(out - ref))))
    print("KERNEL_OK")
</pallas_src>

<mosaic_0001>
module attributes {stable_mosaic.version = 11 : i64} {
  func.func @_fc_skip_kernel(%arg0: i32, %arg1: memref<16x128xbf16, #tpu.memory_space<vmem>>, %arg2: memref<128x128xbf16, #tpu.memory_space<vmem>>, %arg3: memref<1x128xf32, #tpu.memory_space<vmem>>, %arg4: memref<128x128xbf16, #tpu.memory_space<vmem>>, %arg5: memref<1x128xf32, #tpu.memory_space<vmem>>, %arg6: memref<128x1024xbf16, #tpu.memory_space<vmem>>, %arg7: memref<1x1024xf32, #tpu.memory_space<vmem>>, %arg8: memref<16x1024xf32, #tpu.memory_space<vmem>>) attributes {dimension_semantics = [#tpu.dimension_semantics<parallel>], iteration_bounds = array<i64: 1>, scalar_prefetch = 0 : i64, scratch_operands = 0 : i64, tpu.core_type = #tpu.core_type<tc>, window_params = [{transform_indices = @transform_0, window_bounds = array<i64: 16, 128>}, {pipeline_mode = #tpu.pipeline_mode<synchronous>, transform_indices = @transform_1, window_bounds = array<i64: 128, 128>}, {pipeline_mode = #tpu.pipeline_mode<synchronous>, transform_indices = @transform_2, window_bounds = array<i64: 1, 128>}, {pipeline_mode = #tpu.pipeline_mode<synchronous>, transform_indices = @transform_3, window_bounds = array<i64: 128, 128>}, {pipeline_mode = #tpu.pipeline_mode<synchronous>, transform_indices = @transform_4, window_bounds = array<i64: 1, 128>}, {pipeline_mode = #tpu.pipeline_mode<synchronous>, transform_indices = @transform_5, window_bounds = array<i64: 128, 1024>}, {pipeline_mode = #tpu.pipeline_mode<synchronous>, transform_indices = @transform_6, window_bounds = array<i64: 1, 1024>}, {transform_indices = @transform_7, window_bounds = array<i64: 16, 1024>}]} {
    %c0 = arith.constant 0 : index
    %c0_0 = arith.constant 0 : index
    %0 = vector.load %arg1[%c0, %c0_0] : memref<16x128xbf16, #tpu.memory_space<vmem>>, vector<16x128xbf16>
    %c0_1 = arith.constant 0 : index
    %c0_2 = arith.constant 0 : index
    %1 = vector.load %arg2[%c0_1, %c0_2] : memref<128x128xbf16, #tpu.memory_space<vmem>>, vector<128x128xbf16>
    %cst = arith.constant dense<0.000000e+00> : vector<16x128xf32>
    %2 = tpu.matmul %0, %1, %cst {dimension_numbers = #tpu.dot_dimension_numbers<[1], [0], [0], [1], [0, 0, 1, 1], [], []>} : vector<16x128xbf16>, vector<128x128xbf16>, vector<16x128xf32> -> vector<16x128xf32>
    %c0_3 = arith.constant 0 : index
    %c0_4 = arith.constant 0 : index
    %3 = vector.load %arg3[%c0_3, %c0_4] : memref<1x128xf32, #tpu.memory_space<vmem>>, vector<1x128xf32>
    %4 = vector.broadcast %3 : vector<1x128xf32> to vector<16x128xf32>
    %5 = arith.addf %2, %4 : vector<16x128xf32>
    %cst_5 = arith.constant 0.000000e+00 : f32
    %6 = vector.broadcast %cst_5 : f32 to vector<16x128xf32>
    %7 = arith.maximumf %5, %6 : vector<16x128xf32>
    %8 = arith.truncf %7 : vector<16x128xf32> to vector<16x128xbf16>
    %c0_6 = arith.constant 0 : index
    %c0_7 = arith.constant 0 : index
    %9 = vector.load %arg4[%c0_6, %c0_7] : memref<128x128xbf16, #tpu.memory_space<vmem>>, vector<128x128xbf16>
    %cst_8 = arith.constant dense<0.000000e+00> : vector<16x128xf32>
    %10 = tpu.matmul %8, %9, %cst_8 {dimension_numbers = #tpu.dot_dimension_numbers<[1], [0], [0], [1], [0, 0, 1, 1], [], []>} : vector<16x128xbf16>, vector<128x128xbf16>, vector<16x128xf32> -> vector<16x128xf32>
    %c0_9 = arith.constant 0 : index
    %c0_10 = arith.constant 0 : index
    %11 = vector.load %arg5[%c0_9, %c0_10] : memref<1x128xf32, #tpu.memory_space<vmem>>, vector<1x128xf32>
    %12 = vector.broadcast %11 : vector<1x128xf32> to vector<16x128xf32>
    %13 = arith.addf %10, %12 : vector<16x128xf32>
    %cst_11 = arith.constant 0.000000e+00 : f32
    %14 = vector.broadcast %cst_11 : f32 to vector<16x128xf32>
    %15 = arith.maximumf %13, %14 : vector<16x128xf32>
    %16 = arith.addf %15, %7 : vector<16x128xf32>
    %17 = arith.truncf %16 : vector<16x128xf32> to vector<16x128xbf16>
    %c0_i32 = arith.constant 0 : i32
    %c512_i32 = arith.constant 512 : i32
    %18 = arith.muli %c0_i32, %c512_i32 : i32
    %19 = tpu.assume_multiple %18, 512 : i32
    %c0_12 = arith.constant 0 : index
    %20 = arith.index_cast %19 : i32 to index
    %21 = vector.load %arg6[%c0_12, %20] : memref<128x1024xbf16, #tpu.memory_space<vmem>>, vector<128x512xbf16>
    %cst_13 = arith.constant dense<0.000000e+00> : vector<16x512xf32>
    %22 = tpu.matmul %17, %21, %cst_13 {dimension_numbers = #tpu.dot_dimension_numbers<[1], [0], [0], [1], [0, 0, 1, 1], [], []>} : vector<16x128xbf16>, vector<128x512xbf16>, vector<16x512xf32> -> vector<16x512xf32>
    %c0_14 = arith.constant 0 : index
    %23 = arith.index_cast %19 : i32 to index
    %24 = vector.load %arg7[%c0_14, %23] : memref<1x1024xf32, #tpu.memory_space<vmem>>, vector<1x512xf32>
    %25 = vector.broadcast %24 : vector<1x512xf32> to vector<16x512xf32>
    %26 = arith.addf %22, %25 : vector<16x512xf32>
    %27 = math.tanh %26 : vector<16x512xf32>
    %c0_15 = arith.constant 0 : index
    %28 = arith.index_cast %19 : i32 to index
    %29 = vector.load %arg8[%c0_15, %28] : memref<16x1024xf32, #tpu.memory_space<vmem>>, vector<16x512xf32>
    tpu.vector_store %arg8[%c0_15, %28], %27 {strides = array<i32>} : memref<16x1024xf32, #tpu.memory_space<vmem>>, vector<16x512xf32>,
    %c1_i32 = arith.constant 1 : i32
    %c512_i32_16 = arith.constant 512 : i32
    %30 = arith.muli %c1_i32, %c512_i32_16 : i32
    %31 = tpu.assume_multiple %30, 512 : i32
    %c0_17 = arith.constant 0 : index
    %32 = arith.index_cast %31 : i32 to index
    %33 = vector.load %arg6[%c0_17, %32] : memref<128x1024xbf16, #tpu.memory_space<vmem>>, vector<128x512xbf16>
    %cst_18 = arith.constant dense<0.000000e+00> : vector<16x512xf32>
    %34 = tpu.matmul %17, %33, %cst_18 {dimension_numbers = #tpu.dot_dimension_numbers<[1], [0], [0], [1], [0, 0, 1, 1], [], []>} : vector<16x128xbf16>, vector<128x512xbf16>, vector<16x512xf32> -> vector<16x512xf32>
    %c0_19 = arith.constant 0 : index
    %35 = arith.index_cast %31 : i32 to index
    %36 = vector.load %arg7[%c0_19, %35] : memref<1x1024xf32, #tpu.memory_space<vmem>>, vector<1x512xf32>
    %37 = vector.broadcast %36 : vector<1x512xf32> to vector<16x512xf32>
    %38 = arith.addf %34, %37 : vector<16x512xf32>
    %39 = math.tanh %38 : vector<16x512xf32>
    %c0_20 = arith.constant 0 : index
    %40 = arith.index_cast %31 : i32 to index
    %41 = vector.load %arg8[%c0_20, %40] : memref<16x1024xf32, #tpu.memory_space<vmem>>, vector<16x512xf32>
    tpu.vector_store %arg8[%c0_20, %40], %39 {strides = array<i32>} : memref<16x1024xf32, #tpu.memory_space<vmem>>, vector<16x512xf32>,
    %c2_i32 = arith.constant 2 : i32
    return
  }
  func.func @transform_0(%arg0: i32) -> (i32, i32) {
    %c0_i32 = arith.constant 0 : i32
    %c0_i32_0 = arith.constant 0 : i32
    return %arg0, %c0_i32 : i32, i32
  }
  func.func @transform_1(%arg0: i32) -> (i32, i32) {
    %c0_i32 = arith.constant 0 : i32
    %c0_i32_0 = arith.constant 0 : i32
    %c0_i32_1 = arith.constant 0 : i32
    return %c0_i32, %c0_i32_0 : i32, i32
  }
  func.func @transform_2(%arg0: i32) -> (i32, i32) {
    %c0_i32 = arith.constant 0 : i32
    %c0_i32_0 = arith.constant 0 : i32
    %c0_i32_1 = arith.constant 0 : i32
    return %c0_i32, %c0_i32_0 : i32, i32
  }
  func.func @transform_3(%arg0: i32) -> (i32, i32) {
    %c0_i32 = arith.constant 0 : i32
    %c0_i32_0 = arith.constant 0 : i32
    %c0_i32_1 = arith.constant 0 : i32
    return %c0_i32, %c0_i32_0 : i32, i32
  }
  func.func @transform_4(%arg0: i32) -> (i32, i32) {
    %c0_i32 = arith.constant 0 : i32
    %c0_i32_0 = arith.constant 0 : i32
    %c0_i32_1 = arith.constant 0 : i32
    return %c0_i32, %c0_i32_0 : i32, i32
  }
  func.func @transform_5(%arg0: i32) -> (i32, i32) {
    %c0_i32 = arith.constant 0 : i32
    %c0_i32_0 = arith.constant 0 : i32
    %c0_i32_1 = arith.constant 0 : i32
    return %c0_i32, %c0_i32_0 : i32, i32
  }
  func.func @transform_6(%arg0: i32) -> (i32, i32) {
    %c0_i32 = arith.constant 0 : i32
    %c0_i32_0 = arith.constant 0 : i32
    %c0_i32_1 = arith.constant 0 : i32
    return %c0_i32, %c0_i32_0 : i32, i32
  }
  func.func @transform_7(%arg0: i32) -> (i32, i32) {
    %c0_i32 = arith.constant 0 : i32
    %c0_i32_0 = arith.constant 0 : i32
    return %arg0, %c0_i32 : i32, i32
  }
}

</mosaic_0001>

<bundles_post_ra>
// kernel: fc_skip_connect_generator.1
= control target key start
LH: loop header
LB: loop body
LE: loop exit
PB: predicated region body
PF: predicated region fallthrough
CT: control target
= control target key end

     0   :  { %12 = vsyncpa [#allocation3], 0  ;;  %s1404_s0 = inlined_call_operand.vmem [shape: bf16[16,128], index: 0, kind: input, shape index: {}]   ;;  %s1405_s1 = inlined_call_operand.hbm [shape: bf16[128,128], index: 1, kind: input, shape index: {}]   ;;  %s1406_s2 = inlined_call_operand.vmem [shape: f32[1,128], index: 2, kind: input, shape index: {}]   ;;  %s1407_s3 = inlined_call_operand.hbm [shape: bf16[128,128], index: 3, kind: input, shape index: {}]   ;;  %s1408_s4 = inlined_call_operand.vmem [shape: f32[1,128], index: 4, kind: input, shape index: {}]   ;;  %s1409_s5 = inlined_call_operand.hbm [shape: bf16[128,1024], index: 5, kind: input, shape index: {}]   ;;  %s1410_s6 = inlined_call_operand.vmem [shape: f32[1,1024], index: 6, kind: input, shape index: {}]   ;;  %s1411_s7 = inlined_call_operand.vmem [shape: f32[16,1024], index: 7, kind: output, shape index: {}]  }
   0x1   :  { %13 = vsyncpa [#allocation5], 0  ;;  %s1228_s24 = smov [#allocation4]   ;;  %s1229_s26 = smov [#allocation2]  }
   0x2   :  { %s35_s25 = sshll.u32 %s1228_s24, 4  ;;  %s21_s27 = sshll.u32 %s1229_s26, 4  ;;  %s36_s25 = int_to_ptr.vmem [resolvable:$true] %s35_s25  ;;  %s1278_s27 = int_to_ptr.vmem [resolvable:$true] %s21_s27 }
   0x3   :  { %s1158_s30 = scalar_lea.hbm %s1407_s3, 1024 }
   0x4   :  { %p1159_p0 = scmp.ne.s32.totalorder %s1407_s3, %s1158_s30  ;;  %p1162_p1 = scmp.lt.u32.totalorder %s1158_s30, %s1407_s3 }
   0x6   :  { %p1164_p2 = pnand %p1162_p1, %p1159_p0 }
   0x8   :  { %1167 = shalt.err (!%p1164_p2)
}
   0x9   :  { %s1168_s12 = scalar_lea.vmem %s36_s25, 1024  ;;  %p1173_p4 = scmp.lt.s32.totalorder %s36_s25, %s36_s25 }
   0xa   :  { %p1169_p3 = scmp.ne.s32.totalorder %s36_s25, %s1168_s12  ;;  %p1174_p5 = scmp.lt.s32.totalorder %s1168_s12, %s1168_s12 }
   0xc   :  { %p1175_p6 = por %p1174_p5, %p1173_p4 }
   0xe   :  { %p1176_p7 = pnand %p1175_p6, %p1169_p3 }
  0x10   :  { %1179 = shalt.err (!%p1176_p7)
}
  0x11   :  { %s1230_s13 = smov 64   ;;  %s1231_s14 = smov 4  }
  0x12   :  { %41 = dma.hbm_to_vmem [thread:$0]  %s1407_s3, 1024, %s36_s25, [#allocation5], %s1230_s13, %s1230_s13, %s1231_s14  }
  0x13   :  { %s1180_s19 = scalar_lea.hbm %s1405_s1, 1024 }
  0x14   :  { %p1181_p8 = scmp.ne.s32.totalorder %s1405_s1, %s1180_s19  ;;  %p1184_p9 = scmp.lt.u32.totalorder %s1180_s19, %s1405_s1 }
  0x16   :  { %p1186_p10 = pnand %p1184_p9, %p1181_p8 }
  0x18   :  { %1189 = shalt.err (!%p1186_p10)
}
  0x19   :  { %s1190_s24 = scalar_lea.vmem %s1278_s27, 1024  ;;  %p1195_p12 = scmp.lt.s32.totalorder %s1278_s27, %s1278_s27 }
  0x1a   :  { %p1191_p11 = scmp.ne.s32.totalorder %s1278_s27, %s1190_s24  ;;  %p1196_p13 = scmp.lt.s32.totalorder %s1190_s24, %s1190_s24 }
  0x1c   :  { %p1197_p0 = por %p1196_p13, %p1195_p12 }
  0x1e   :  { %p1198_p1 = pnand %p1197_p0, %p1191_p11 }
  0x20   :  { %1201 = shalt.err (!%p1198_p1)
}
  0x21   :  { %27 = dma.hbm_to_vmem [thread:$0]  %s1405_s1, 1024, %s1278_s27, [#allocation3], %s1230_s13, %s1230_s13, %s1231_s14  }
  0x22   :  { %s1232_s26 = smov [#allocation6]   ;;  %s1202_s8 = scalar_lea.hbm %s1409_s5, 8192 }
  0x23   :  { %s49_s28 = sshll.u32 %s1232_s26, 4  ;;  %p1203_p2 = scmp.ne.s32.totalorder %s1409_s5, %s1202_s8  ;;  %s50_s28 = int_to_ptr.vmem [resolvable:$true] %s49_s28 }
  0x24   :  { %p1206_p3 = scmp.lt.u32.totalorder %s1202_s8, %s1409_s5 }
  0x26   :  { %p1208_p4 = pnand %p1206_p3, %p1203_p2 }
  0x28   :  { %1211 = shalt.err (!%p1208_p4)
}
  0x29   :  { %s1212_s15 = scalar_lea.vmem %s50_s28, 8192  ;;  %p1217_p6 = scmp.lt.s32.totalorder %s50_s28, %s50_s28 }
  0x2a   :  { %p1213_p5 = scmp.ne.s32.totalorder %s50_s28, %s1212_s15  ;;  %p1218_p7 = scmp.lt.s32.totalorder %s1212_s15, %s1212_s15 }
  0x2c   :  { %p1219_p8 = por %p1218_p7, %p1217_p6 }
  0x2e   :  { %p1220_p9 = pnand %p1219_p8, %p1213_p5 }
  0x30   :  { %1223 = shalt.err (!%p1220_p9)
}
  0x31   :  { %s1233_s1 = smov 512   ;;  %s1234_s27 = smov 32  }
  0x32   :  { %55 = dma.hbm_to_vmem [thread:$0]  %s1409_s5, 8192, %s50_s28, [#allocation5], %s1233_s1, %s1233_s1, %s1234_s27  }
  0x33   :  { %1224 = dma.done.wait [#allocation3], 1024  }
  0x34   :  { %1225 = vsyncadd [#allocation3], 4294966272 }
  0x35   :  { %1226 = dma.done.wait [#allocation5], 9216  }
  0x36   :  { %1227 = vsyncadd [#allocation5], 4294958080  ;;  %v1235_v0 = vmov 0.0   ;;  %vm1236_vm0 = vmmov 0   ;;  %v1109_v1 = vld [vmem:[#allocation2] sm:$0xff]   ;;  %v1110_v2 = vld [vmem:[#allocation2 + $0x8] sm:$0xff]  }
  0x37   :  { %1059 = vmatprep.subr.bf16.mxu0 %v1235_v0  ;;  %1075 = vmatprep.mubr.msk.bf16.mxu0 %vm1236_vm0, %v1235_v0  ;;  %v1111_v3 = vld [vmem:[#allocation2 + $0x10] sm:$0xff]   ;;  %v1118_v4 = vld [vmem:[#allocation4] sm:$0xff]   ;;  %v1112_v5 = vld [vmem:[#allocation2 + $0x18] sm:$0xff]  }
  0x38   :  { %1079 = vmatprep.subr.bf16.mxu1 %v1235_v0  ;;  %1095 = vmatprep.mubr.msk.bf16.mxu1 %vm1236_vm0, %v1235_v0  ;;  %v1119_v6 = vld [vmem:[#allocation4 + $0x8] sm:$0xff]   ;;  %v1113_v7 = vld [vmem:[#allocation2 + $0x20] sm:$0xff]   ;;  %v1120_v8 = vld [vmem:[#allocation4 + $0x10] sm:$0xff]  }
  0x39   :  { %1060 = vmatpush3.bf16.msra.mxu0 %v1109_v1  ;;  %1080 = vmatpush3.bf16.msra.mxu1 %v1118_v4  ;;  %v1114_v9 = vld [vmem:[#allocation2 + $0x28] sm:$0xff]   ;;  %v1121_v10 = vld [vmem:[#allocation4 + $0x18] sm:$0xff]   ;;  %v1115_v11 = vld [vmem:[#allocation2 + $0x30] sm:$0xff]  }
  0x3a   :  { %1061 = vmatprep.subr.bf16.mxu0 %v1235_v0  ;;  %1081 = vmatprep.subr.bf16.mxu1 %v1235_v0  ;;  %v1122_v12 = vld [vmem:[#allocation4 + $0x20] sm:$0xff]   ;;  %v1116_v13 = vld [vmem:[#allocation2 + $0x38] sm:$0xff]   ;;  %v1123_v14 = vld [vmem:[#allocation4 + $0x28] sm:$0xff]  }
  0x3b   :  { %v1117_v15 = vld [vmem:[%s1404_s0] sm:$0xff]   ;;  %v1124_v16 = vld [vmem:[#allocation4 + $0x30] sm:$0xff]   ;;  %v1125_v17 = vld [vmem:[#allocation4 + $0x38] sm:$0xff]  }
  0x3c   :  { %v308_v18 = vld [vmem:[#allocation6] sm:$0xff]  ;;  %v309_v20 = vld [vmem:[#allocation6 + $0x8] sm:$0xff] }
  0x3d   :  { %1062 = vmatpush3.bf16.msra.mxu0 %v1110_v2  ;;  %1082 = vmatpush3.bf16.msra.mxu1 %v1119_v6  ;;  %v310_v19 = vld [vmem:[#allocation6 + $0x20] sm:$0xff]  ;;  %v311_v23 = vld [vmem:[#allocation6 + $0x28] sm:$0xff] }
  0x3e   :  { %1063 = vmatprep.subr.bf16.mxu0 %v1235_v0  ;;  %1083 = vmatprep.subr.bf16.mxu1 %v1235_v0  ;;  %v968_v21 = vcombine.low %v308_v18, %v310_v19  ;;  %v969_v22 = vcombine.high %v308_v18, %v310_v19  ;;  %v312_v24 = vld [vmem:[#allocation6 + $0x40] sm:$0xff]  ;;  %v970_v26 = vcombine.low %v309_v20, %v311_v23  ;;  %v313_v53 = vld [vmem:[#allocation6 + $0x48] sm:$0xff] }
  0x3f   :  { %v314_v25 = vld [vmem:[#allocation6 + $0x60] sm:$0xff]  ;;  %v971_v27 = vcombine.high %v309_v20, %v311_v23  ;;  %v315_v54 = vld [vmem:[#allocation6 + $0x68] sm:$0xff] }
  0x40   :  { %v973_v28 = vcombine.high %v312_v24, %v314_v25  ;;  %v972_v29 = vcombine.low %v312_v24, %v314_v25  ;;  %v316_v30 = vld [vmem:[#allocation6 + $0x80] sm:$0xff]  ;;  %v975_v58 = vcombine.high %v313_v53, %v315_v54  ;;  %v317_v59 = vld [vmem:[#allocation6 + $0x88] sm:$0xff]  ;;  %v974_v61 = vcombine.low %v313_v53, %v315_v54 }
  0x41   :  { %1064 = vmatpush3.bf16.msra.mxu0 %v1111_v3  ;;  %1084 = vmatpush3.bf16.msra.mxu1 %v1120_v8  ;;  %v318_v31 = vld [vmem:[#allocation6 + $0xa0] sm:$0xff]  ;;  %v319_v60 = vld [vmem:[#allocation6 + $0xa8] sm:$0xff] }
  0x42   :  { %1065 = vmatprep.subr.bf16.mxu0 %v1235_v0  ;;  %1085 = vmatprep.subr.bf16.mxu1 %v1235_v0  ;;  %v977_v32 = vcombine.high %v316_v30, %v318_v31  ;;  %v976_v33 = vcombine.low %v316_v30, %v318_v31  ;;  %v320_v34 = vld [vmem:[#allocation6 + $0xc0] sm:$0xff]  ;;  %v979_v62 = vcombine.high %v317_v59, %v319_v60  ;;  %v321_v63 = vld [vmem:[#allocation6 + $0xc8] sm:$0xff]  ;;  %v626_v30 = vld [vmem:[#allocation6 + $0x18] sm:$0xff] }
  0x43   :  { %v322_v35 = vld [vmem:[#allocation6 + $0xe0] sm:$0xff]  ;;  %v978_v1 = vcombine.low %v317_v59, %v319_v60  ;;  %v325_v3 = vld [vmem:[#allocation6 + $0x108] sm:$0xff]  ;;  %v633_v59 = vld [vmem:[#allocation6 + $0x90] sm:$0xff] }
  0x44   :  { %v981_v36 = vcombine.high %v320_v34, %v322_v35  ;;  %v980_v37 = vcombine.low %v320_v34, %v322_v35  ;;  %v324_v38 = vld [vmem:[#allocation6 + $0x100] sm:$0xff]  ;;  %v327_v4 = vld [vmem:[#allocation6 + $0x128] sm:$0xff]  ;;  %v635_v60 = vld [vmem:[#allocation6 + $0xb0] sm:$0xff] }
  0x45   :  { %1066 = vmatpush3.bf16.msra.mxu0 %v1112_v5  ;;  %1086 = vmatpush3.bf16.msra.mxu1 %v1121_v10  ;;  %v326_v39 = vld [vmem:[#allocation6 + $0x120] sm:$0xff]  ;;  %v987_v6 = vcombine.high %v325_v3, %v327_v4  ;;  %v331_v8 = vld [vmem:[#allocation6 + $0x168] sm:$0xff] }
  0x46   :  { %1067 = vmatprep.subr.bf16.mxu0 %v1235_v0  ;;  %1087 = vmatprep.subr.bf16.mxu1 %v1235_v0  ;;  %v985_v40 = vcombine.high %v324_v38, %v326_v39  ;;  %v984_v41 = vcombine.low %v324_v38, %v326_v39  ;;  %v328_v42 = vld [vmem:[#allocation6 + $0x140] sm:$0xff]  ;;  %v339_v24 = vld [vmem:[#allocation6 + $0x1e8] sm:$0xff] }
  0x47   :  { %v330_v43 = vld [vmem:[#allocation6 + $0x160] sm:$0xff] }
  0x48   :  { %v989_v44 = vcombine.high %v328_v42, %v330_v43  ;;  %v988_v45 = vcombine.low %v328_v42, %v330_v43  ;;  %v949_v46 = vld [vmem:[%s1406_s2] ss:$0 sm:$0xff] }
  0x49   :  { %1068 = vmatpush3.bf16.msra.mxu0 %v1113_v7  ;;  %1088 = vmatpush3.bf16.msra.mxu1 %v1122_v12  ;;  %v329_v7 = vld [vmem:[#allocation6 + $0x148] sm:$0xff]  ;;  %v332_v12 = vld [vmem:[#allocation6 + $0x180] sm:$0xff] }
  0x4a   :  { %1069 = vmatprep.subr.bf16.mxu0 %v1235_v0  ;;  %1089 = vmatprep.subr.bf16.mxu1 %v1235_v0  ;;  %v991_v10 = vcombine.high %v329_v7, %v331_v8  ;;  %v336_v20 = vld [vmem:[#allocation6 + $0x1c0] sm:$0xff] }
  0x4d   :  { %1070 = vmatpush3.bf16.msra.mxu0 %v1114_v9  ;;  %1090 = vmatpush3.bf16.msra.mxu1 %v1123_v14  ;;  %v986_v9 = vcombine.low %v325_v3, %v327_v4  ;;  %v333_v14 = vld [vmem:[#allocation6 + $0x188] sm:$0xff]  ;;  %v1009_v3 = vcombine.low %v633_v59, %v635_v60 }
  0x4e   :  { %1071 = vmatprep.subr.bf16.mxu0 %v1235_v0  ;;  %1091 = vmatprep.subr.bf16.mxu1 %v1235_v0 }
  0x51   :  { %1072 = vmatpush3.bf16.msra.mxu0 %v1115_v11  ;;  %1092 = vmatpush3.bf16.msra.mxu1 %v1124_v16  ;;  %v990_v11 = vcombine.low %v329_v7, %v331_v8  ;;  %v335_v16 = vld [vmem:[#allocation6 + $0x1a8] sm:$0xff]  ;;  %v641_v7 = vld [vmem:[#allocation6 + $0x110] sm:$0xff] }
  0x52   :  { %1073 = vmatprep.subr.bf16.mxu0 %v1235_v0  ;;  %1093 = vmatprep.subr.bf16.mxu1 %v1235_v0  ;;  %v323_v0 = vld [vmem:[#allocation6 + $0xe8] sm:$0xff]  ;;  %v994_v18 = vcombine.low %v333_v14, %v335_v16  ;;  %v995_v19 = vcombine.high %v333_v14, %v335_v16  ;;  %v643_v8 = vld [vmem:[#allocation6 + $0x130] sm:$0xff] }
  0x53   :  { %v983_v2 = vcombine.high %v321_v63, %v323_v0  ;;  %v982_v5 = vcombine.low %v321_v63, %v323_v0  ;;  %v639_v0 = vld [vmem:[#allocation6 + $0xf0] sm:$0xff] }
  0x54   :  { %v647_v16 = vld [vmem:[#allocation6 + $0x170] sm:$0xff] }
  0x55   :  { %1074 = vmatpush3.bf16.msra.mxu0 %v1116_v13  ;;  %1094 = vmatpush3.bf16.msra.mxu1 %v1125_v17  ;;  %v334_v13 = vld [vmem:[#allocation6 + $0x1a0] sm:$0xff] }
  0x56   :  { %522 = vmatprep.subr.bf16.mxu0 %v969_v22  ;;  %565 = vmatprep.subr.bf16.mxu1 %v971_v27  ;;  %v992_v17 = vcombine.low %v332_v12, %v334_v13  ;;  %v337_v22 = vld [vmem:[#allocation6 + $0x1c8] sm:$0xff] }
  0x57   :  { %v999_v27 = vcombine.high %v337_v22, %v339_v24 }
  0x58   :  { %1076 = vmatmul.mubr.bf16.vlgmr.msra.gmra.mrb[0].mxu0 %v1117_v15  ;;  %v993_v15 = vcombine.high %v332_v12, %v334_v13  ;;  %v1018_v13 = vcombine.high %v641_v7, %v643_v8 }
  0x59   :  { %523 = vmatpush1.bf16.msra.mxu0 %v968_v21  ;;  %v338_v21 = vld [vmem:[#allocation6 + $0x1e0] sm:$0xff] }
  0x5a   :  { %524 = vmatprep.subr.bf16.mxu0 %v973_v28  ;;  %v997_v23 = vcombine.high %v336_v20, %v338_v21  ;;  %v996_v25 = vcombine.low %v336_v20, %v338_v21  ;;  %v625_v28 = vld [vmem:[#allocation6 + $0x10] sm:$0xff] }
  0x5d   :  { %525 = vmatpush1.bf16.msra.mxu0 %v972_v29  ;;  %v627_v29 = vld [vmem:[#allocation6 + $0x30] sm:$0xff] }
  0x5e   :  { %526 = vmatprep.subr.bf16.mxu0 %v977_v32  ;;  %v1002_v31 = vcombine.high %v625_v28, %v627_v29  ;;  %v628_v32 = vld [vmem:[#allocation6 + $0x38] sm:$0xff] }
  0x5f   :  { %v1003_v34 = vcombine.low %v626_v30, %v628_v32  ;;  %v1004_v35 = vcombine.high %v626_v30, %v628_v32  ;;  %v655_v32 = vld [vmem:[#allocation6 + $0x1f0] sm:$0xff] }
  0x61   :  { %527 = vmatpush1.bf16.msra.mxu0 %v976_v33  ;;  %v1001_v33 = vcombine.low %v625_v28, %v627_v29 }
  0x62   :  { %528 = vmatprep.subr.bf16.mxu0 %v981_v36  ;;  %v1237_v36 = vmov 0  }
  0x63   :  { %554 = vmatprep.mubr.bf16.mxu0 %v1237_v36 }
  0x65   :  { %529 = vmatpush1.bf16.msra.mxu0 %v980_v37  ;;  %v959_v37 = vld [vmem:[%s1408_s4] ss:$0 sm:$0xff] }
  0x66   :  { %530 = vmatprep.subr.bf16.mxu0 %v985_v40 }
  0x69   :  { %531 = vmatpush1.bf16.msra.mxu0 %v984_v41 }
  0x6a   :  { %532 = vmatprep.subr.bf16.mxu0 %v989_v44 }
  0x6d   :  { %533 = vmatpush1.bf16.msra.mxu0 %v988_v45 }
  0x6e   :  { %534 = vmatprep.subr.bf16.mxu0 %v993_v15  ;;  %v645_v15 = vld [vmem:[#allocation6 + $0x150] sm:$0xff] }
  0x6f   :  { %v1022_v21 = vcombine.high %v645_v15, %v647_v16 }
  0x71   :  { %535 = vmatpush1.bf16.msra.mxu0 %v992_v17  ;;  %v646_v17 = vld [vmem:[#allocation6 + $0x158] sm:$0xff] }
  0x72   :  { %536 = vmatprep.subr.bf16.mxu0 %v997_v23  ;;  %v649_v23 = vld [vmem:[#allocation6 + $0x190] sm:$0xff] }
  0x75   :  { %537 = vmatpush1.bf16.msra.mxu0 %v996_v25  ;;  %v650_v25 = vld [vmem:[#allocation6 + $0x198] sm:$0xff] }
  0x76   :  { %840 = vmatprep.subr.bf16.mxu0 %v1002_v31  ;;  %v653_v31 = vld [vmem:[#allocation6 + $0x1d0] sm:$0xff] }
 0x12b   :  { %v181_v47 = vpop.f32.mrb[0].mxu0 }
 0x12c   :  { %v1327_v48 = vadd.f32 %v949_v46, %v181_v47  ;;  %v1077_v49 = vpop.f32.mrb[1].mxu0  ;;  %v631_v47 = vld [vmem:[#allocation6 + $0x70] sm:$0xff] }
 0x12d   :  { %v184_v50 = vpop.f32.mrb[2].mxu0  ;;  %v630_v49 = vld [vmem:[#allocation6 + $0x58] sm:$0xff] }
 0x12e   :  { %v1329_v51 = vadd.f32 %v949_v46, %v184_v50  ;;  %v1078_v52 = vpop.f32.mrb[3].mxu0  ;;  %v188_v55 = vmax.f32 %v1327_v48, 0.0  ;;  %v629_v46 = vld [vmem:[#allocation6 + $0x50] sm:$0xff]  ;;  %v632_v50 = vld [vmem:[#allocation6 + $0x78] sm:$0xff] }
 0x12f   :  { %v1005_v63 = vcombine.low %v629_v46, %v631_v47  ;;  %v1007_v48 = vcombine.low %v630_v49, %v632_v50 }
 0x130   :  { %v189_v56 = vmax.f32 %v1329_v51, 0.0  ;;  %v1010_v51 = vcombine.high %v633_v59, %v635_v60 }
 0x132   :  { %v190_v57 = vpack.c.bf16 %v189_v56, %v188_v55 }
 0x134   :  { %1096 = vmatmul.mubr.bf16.vlgmr.msra.gmra.mrb[0].mxu1 %v190_v57  ;;  %v1006_v57 = vcombine.high %v629_v46, %v631_v47 }
 0x135   :  { %566 = vmatpush1.bf16.msra.mxu1 %v970_v26  ;;  %v998_v26 = vcombine.low %v337_v22, %v339_v24  ;;  %597 = vmatprep.mubr.bf16.mxu1 %v1237_v36  ;;  %v651_v24 = vld [vmem:[#allocation6 + $0x1b0] sm:$0xff] }
 0x136   :  { %567 = vmatprep.subr.bf16.mxu1 %v975_v58  ;;  %v1008_v58 = vcombine.high %v630_v49, %v632_v50  ;;  %v1026_v29 = vcombine.high %v649_v23, %v651_v24 }
 0x139   :  { %568 = vmatpush1.bf16.msra.mxu1 %v974_v61  ;;  %v634_v61 = vld [vmem:[#allocation6 + $0x98] sm:$0xff] }
 0x13a   :  { %569 = vmatprep.subr.bf16.mxu1 %v979_v62  ;;  %v636_v62 = vld [vmem:[#allocation6 + $0xb8] sm:$0xff] }
 0x13b   :  { %v1011_v4 = vcombine.low %v634_v61, %v636_v62 }
 0x13d   :  { %570 = vmatpush1.bf16.msra.mxu1 %v978_v1  ;;  %v638_v1 = vld [vmem:[#allocation6 + $0xd8] sm:$0xff] }
 0x13e   :  { %571 = vmatprep.subr.bf16.mxu1 %v983_v2  ;;  %v640_v2 = vld [vmem:[#allocation6 + $0xf8] sm:$0xff] }
 0x13f   :  { %v1015_v12 = vcombine.low %v638_v1, %v640_v2 }
 0x141   :  { %572 = vmatpush1.bf16.msra.mxu1 %v982_v5 }
 0x142   :  { %573 = vmatprep.subr.bf16.mxu1 %v987_v6  ;;  %v1016_v6 = vcombine.high %v638_v1, %v640_v2 }
 0x145   :  { %574 = vmatpush1.bf16.msra.mxu1 %v986_v9  ;;  %v642_v9 = vld [vmem:[#allocation6 + $0x118] sm:$0xff] }
 0x146   :  { %575 = vmatprep.subr.bf16.mxu1 %v991_v10  ;;  %v644_v10 = vld [vmem:[#allocation6 + $0x138] sm:$0xff] }
 0x147   :  { %v1020_v14 = vcombine.high %v642_v9, %v644_v10  ;;  %v1019_v20 = vcombine.low %v642_v9, %v644_v10 }
 0x149   :  { %576 = vmatpush1.bf16.msra.mxu1 %v990_v11 }
 0x14a   :  { %577 = vmatprep.subr.bf16.mxu1 %v995_v19  ;;  %v1017_v19 = vcombine.low %v641_v7, %v643_v8 }
 0x14d   :  { %578 = vmatpush1.bf16.msra.mxu1 %v994_v18  ;;  %v648_v18 = vld [vmem:[#allocation6 + $0x178] sm:$0xff] }
 0x14e   :  { %579 = vmatprep.subr.bf16.mxu1 %v999_v27  ;;  %v1024_v22 = vcombine.high %v646_v17, %v648_v18  ;;  %v1021_v27 = vcombine.low %v645_v15, %v647_v16  ;;  %v1023_v28 = vcombine.low %v646_v17, %v648_v18 }
 0x151   :  { %580 = vmatpush1.bf16.msra.mxu1 %v998_v26  ;;  %v652_v26 = vld [vmem:[#allocation6 + $0x1b8] sm:$0xff] }
 0x152   :  { %883 = vmatprep.subr.bf16.mxu1 %v1004_v35  ;;  %v1028_v30 = vcombine.high %v650_v25, %v652_v26  ;;  %v1025_v35 = vcombine.low %v649_v23, %v651_v24 }
 0x207   :  { %v296_v38 = vpop.f32.mrb[0].mxu1 }
 0x208   :  { %v297_v39 = vadd.f32 %v959_v37, %v296_v38  ;;  %v1097_v40 = vpop.f32.mrb[1].mxu1 }
 0x209   :  { %v299_v41 = vpop.f32.mrb[2].mxu1 }
 0x20a   :  { %v303_v42 = vmax.f32 %v297_v39, 0.0  ;;  %v300_v43 = vadd.f32 %v959_v37, %v299_v41  ;;  %v1098_v44 = vpop.f32.mrb[3].mxu1  ;;  %v1030_v37 = vcombine.high %v653_v31, %v655_v32  ;;  %v1029_v39 = vcombine.low %v653_v31, %v655_v32 }
 0x20b   :  { %v342_v41 = vlaneseq }
 0x20c   :  { %v304_v45 = vmax.f32 %v300_v43, 0.0  ;;  %v305_v52 = vadd.f32 %v303_v42, %v188_v55  ;;  %v1012_v55 = vcombine.high %v634_v61, %v636_v62 }
 0x20d   :  { %v343_v42 = vshrl.u32 %v342_v41, 7 }
 0x20e   :  { %v306_v53 = vadd.f32 %v304_v45, %v189_v56  ;;  %v637_v56 = vld [vmem:[#allocation6 + $0xd0] sm:$0xff]  ;;  %v340_v45 = vld [vmem:[%s1410_s6] sm:$0xf] }
 0x20f   :  { %v1014_v5 = vcombine.high %v637_v56, %v639_v0  ;;  %v1013_v11 = vcombine.low %v637_v56, %v639_v0  ;;  %v344_v43 = vsub.s32 0, %v343_v42  ;;  %v352_v44 = vsub.s32 2, %v343_v42 }
 0x210   :  { %v1344_v54 = vpack.c.bf16 %v306_v53, %v305_v52  ;;  %v348_v46 = vsub.s32 1, %v343_v42  ;;  %v356_v47 = vsub.s32 3, %v343_v42 }
 0x211   :  { %v345_v49 = vrot.slane %v340_v45, %v344_v43  ;;  %v353_v50 = vrot.slane %v340_v45, %v352_v44 }
 0x212   :  { %555 = vmatmul.mubr.bf16.vlgmr.msra.gmra.mrb[4].mxu0 %v1344_v54  ;;  %598 = vmatmul.mubr.bf16.vlgmr.msra.gmra.mrb[4].mxu1 %v1344_v54  ;;  %v349_v52 = vrot.slane %v340_v45, %v348_v46  ;;  %v357_v53 = vrot.slane %v340_v45, %v356_v47 }
 0x213   :  { %841 = vmatpush1.bf16.msra.mxu0 %v1001_v33  ;;  %884 = vmatpush1.bf16.msra.mxu1 %v1003_v34  ;;  %v654_v33 = vld [vmem:[#allocation6 + $0x1d8] sm:$0xff] }
 0x214   :  { %842 = vmatprep.subr.bf16.mxu0 %v1006_v57  ;;  %885 = vmatprep.subr.bf16.mxu1 %v1008_v58  ;;  %v656_v34 = vld [vmem:[#allocation6 + $0x1f8] sm:$0xff] }
 0x215   :  { %872 = vmatprep.mubr.bf16.mxu0 %v1237_v36  ;;  %915 = vmatprep.mubr.bf16.mxu1 %v1237_v36  ;;  %v1027_v36 = vcombine.low %v650_v25, %v652_v26  ;;  %v1032_v38 = vcombine.high %v654_v33, %v656_v34  ;;  %v1031_v40 = vcombine.low %v654_v33, %v656_v34 }
 0x217   :  { %843 = vmatpush1.bf16.msra.mxu0 %v1005_v63  ;;  %886 = vmatpush1.bf16.msra.mxu1 %v1007_v48 }
 0x218   :  { %844 = vmatprep.subr.bf16.mxu0 %v1010_v51  ;;  %887 = vmatprep.subr.bf16.mxu1 %v1012_v55 }
 0x21b   :  { %845 = vmatpush1.bf16.msra.mxu0 %v1009_v3  ;;  %888 = vmatpush1.bf16.msra.mxu1 %v1011_v4 }
 0x21c   :  { %846 = vmatprep.subr.bf16.mxu0 %v1014_v5  ;;  %889 = vmatprep.subr.bf16.mxu1 %v1016_v6 }
 0x21f   :  { %847 = vmatpush1.bf16.msra.mxu0 %v1013_v11  ;;  %890 = vmatpush1.bf16.msra.mxu1 %v1015_v12  ;;  %v1000_v12 = vld [vmem:[%s1410_s6 + $0x4] sm:$0xf] }
 0x220   :  { %848 = vmatprep.subr.bf16.mxu0 %v1018_v13  ;;  %891 = vmatprep.subr.bf16.mxu1 %v1020_v14  ;;  %v663_v13 = vrot.slane %v1000_v12, %v344_v43  ;;  %v671_v14 = vrot.slane %v1000_v12, %v352_v44  ;;  %v667_v15 = vrot.slane %v1000_v12, %v348_v46 }
 0x221   :  { %v675_v16 = vrot.slane %v1000_v12, %v356_v47 }
 0x223   :  { %849 = vmatpush1.bf16.msra.mxu0 %v1017_v19  ;;  %892 = vmatpush1.bf16.msra.mxu1 %v1019_v20 }
 0x224   :  { %850 = vmatprep.subr.bf16.mxu0 %v1022_v21  ;;  %893 = vmatprep.subr.bf16.mxu1 %v1024_v22 }
 0x227   :  { %851 = vmatpush1.bf16.msra.mxu0 %v1021_v27  ;;  %894 = vmatpush1.bf16.msra.mxu1 %v1023_v28 }
 0x228   :  { %852 = vmatprep.subr.bf16.mxu0 %v1026_v29  ;;  %895 = vmatprep.subr.bf16.mxu1 %v1028_v30 }
 0x22b   :  { %853 = vmatpush1.bf16.msra.mxu0 %v1025_v35  ;;  %896 = vmatpush1.bf16.msra.mxu1 %v1027_v36 }
 0x22c   :  { %854 = vmatprep.subr.bf16.mxu0 %v1030_v37  ;;  %897 = vmatprep.subr.bf16.mxu1 %v1032_v38 }
 0x22f   :  { %855 = vmatpush1.bf16.msra.mxu0 %v1029_v39  ;;  %898 = vmatpush1.bf16.msra.mxu1 %v1031_v40 }
 0x232   :  { %873 = vmatmul.mubr.bf16.vlgmr.msra.gmra.mrb[8].mxu0 %v1344_v54  ;;  %916 = vmatmul.mubr.bf16.vlgmr.msra.gmra.mrb[8].mxu1 %v1344_v54 }
 0x2e5   :  { %v556_v57 = vpop.f32.mrb[4].mxu0  ;;  %v599_v58 = vpop.f32.mrb[4].mxu1 }
 0x2e6   :  { %v557_v59 = vadd.f32 %v556_v57, %v345_v49  ;;  %v600_v60 = vadd.f32 %v599_v58, %v353_v50  ;;  %v558_v61 = vpop.f32.mrb[5].mxu0  ;;  %v601_v54 = vpop.f32.mrb[5].mxu1 }
 0x2e7   :  { %v559_v62 = vadd.f32 %v558_v61, %v349_v52  ;;  %v602_v63 = vadd.f32 %v601_v54, %v357_v53  ;;  %v560_v48 = vpop.f32.mrb[6].mxu0  ;;  %v603_v51 = vpop.f32.mrb[6].mxu1 }
 0x2e8   :  { %1126 = vtanh.f32 %v557_v59  ;;  %v561_v55 = vadd.f32 %v560_v48, %v345_v49  ;;  %v562_v56 = vpop.f32.mrb[7].mxu0  ;;  %v605_v0 = vpop.f32.mrb[7].mxu1  ;;  %v604_v1 = vadd.f32 %v603_v51, %v353_v50 }
 0x2e9   :  { %1128 = vtanh.f32 %v600_v60  ;;  %v563_v2 = vadd.f32 %v562_v56, %v349_v52  ;;  %v606_v3 = vadd.f32 %v605_v0, %v357_v53 }
 0x2ea   :  { %1130 = vtanh.f32 %v559_v62 }
 0x2eb   :  { %1132 = vtanh.f32 %v602_v63 }
 0x2ec   :  { %1134 = vtanh.f32 %v561_v55 }
 0x2ed   :  { %1136 = vtanh.f32 %v604_v1 }
 0x2ee   :  { %1138 = vtanh.f32 %v563_v2 }
 0x2ef   :  { %1140 = vtanh.f32 %v606_v3 }
 0x2f2   :  { %v1127_v4 = vpop.eup %1126 }
 0x2f3   :  { %v1129_v5 = vpop.eup %1128  ;;  %616 = vst [vmem:[%s1411_s7] sm:$0xff] %v1127_v4 }
 0x2f4   :  { %v1131_v6 = vpop.eup %1130  ;;  %618 = vst [vmem:[%s1411_s7 + $0x10] sm:$0xff] %v1129_v5 }
 0x2f5   :  { %v1133_v7 = vpop.eup %1132  ;;  %617 = vst [vmem:[%s1411_s7 + $0x8] sm:$0xff] %v1131_v6 }
 0x2f6   :  { %v1135_v8 = vpop.eup %1134  ;;  %619 = vst [vmem:[%s1411_s7 + $0x18] sm:$0xff] %v1133_v7 }
 0x2f7   :  { %v1137_v9 = vpop.eup %1136  ;;  %620 = vst [vmem:[%s1411_s7 + $0x40] sm:$0xff] %v1135_v8 }
 0x2f8   :  { %v1139_v10 = vpop.eup %1138  ;;  %622 = vst [vmem:[%s1411_s7 + $0x50] sm:$0xff] %v1137_v9 }
 0x2f9   :  { %v1141_v11 = vpop.eup %1140  ;;  %621 = vst [vmem:[%s1411_s7 + $0x48] sm:$0xff] %v1139_v10 }
 0x2fa   :  { %623 = vst [vmem:[%s1411_s7 + $0x58] sm:$0xff] %v1141_v11 }
 0x305   :  { %v874_v17 = vpop.f32.mrb[8].mxu0  ;;  %v917_v18 = vpop.f32.mrb[8].mxu1 }
 0x306   :  { %v875_v19 = vadd.f32 %v874_v17, %v663_v13  ;;  %v918_v20 = vadd.f32 %v917_v18, %v671_v14  ;;  %v876_v21 = vpop.f32.mrb[9].mxu0  ;;  %v919_v22 = vpop.f32.mrb[9].mxu1 }
 0x307   :  { %v877_v23 = vadd.f32 %v876_v21, %v667_v15  ;;  %v920_v24 = vadd.f32 %v919_v22, %v675_v16  ;;  %v878_v25 = vpop.f32.mrb[10].mxu0  ;;  %v921_v26 = vpop.f32.mrb[10].mxu1 }
 0x308   :  { %1142 = vtanh.f32 %v875_v19  ;;  %v879_v27 = vadd.f32 %v878_v25, %v663_v13  ;;  %v880_v28 = vpop.f32.mrb[11].mxu0  ;;  %v923_v29 = vpop.f32.mrb[11].mxu1  ;;  %v922_v30 = vadd.f32 %v921_v26, %v671_v14 }
 0x309   :  { %1144 = vtanh.f32 %v918_v20  ;;  %v881_v31 = vadd.f32 %v880_v28, %v667_v15  ;;  %v924_v32 = vadd.f32 %v923_v29, %v675_v16 }
 0x30a   :  { %1146 = vtanh.f32 %v877_v23 }
 0x30b   :  { %1148 = vtanh.f32 %v920_v24 }
 0x30c   :  { %1150 = vtanh.f32 %v879_v27 }
 0x30d   :  { %1152 = vtanh.f32 %v922_v30 }
 0x30e   :  { %1154 = vtanh.f32 %v881_v31 }
 0x30f   :  { %1156 = vtanh.f32 %v924_v32 }
 0x312   :  { %v1143_v33 = vpop.eup %1142 }
 0x313   :  { %v1145_v34 = vpop.eup %1144  ;;  %1033 = vst [vmem:[%s1411_s7 + $0x20] sm:$0xff] %v1143_v33 }
 0x314   :  { %v1147_v35 = vpop.eup %1146  ;;  %1035 = vst [vmem:[%s1411_s7 + $0x30] sm:$0xff] %v1145_v34 }
 0x315   :  { %v1149_v36 = vpop.eup %1148  ;;  %1034 = vst [vmem:[%s1411_s7 + $0x28] sm:$0xff] %v1147_v35 }
 0x316   :  { %v1151_v37 = vpop.eup %1150  ;;  %1036 = vst [vmem:[%s1411_s7 + $0x38] sm:$0xff] %v1149_v36 }
 0x317   :  { %v1153_v38 = vpop.eup %1152  ;;  %1037 = vst [vmem:[%s1411_s7 + $0x60] sm:$0xff] %v1151_v37 }
 0x318   :  { %v1155_v39 = vpop.eup %1154  ;;  %1039 = vst [vmem:[%s1411_s7 + $0x70] sm:$0xff] %v1153_v38 }
 0x319   :  { %v1157_v40 = vpop.eup %1156  ;;  %1038 = vst [vmem:[%s1411_s7 + $0x68] sm:$0xff] %v1155_v39 }
 0x31a   :  { %1040 = vst [vmem:[%s1411_s7 + $0x78] sm:$0xff] %v1157_v40 }
 0x31b   :  { %947 = vsyncpa [#allocation3], 1 }
 0x31c   :  { %948 = vsyncpa [#allocation5], 1 }

</bundles_post_ra>
